<compile_context>
chip_gen: v7x
topology: tpu7x:2x2x1
jax: 0.10.0
libtpu: 0.0.40
codegen_flags: <defaults>
</compile_context>

<pallas_src>
import numpy as np
import jax
import jax.numpy as jnp
from jax.experimental import pallas as pl
from jax.experimental.pallas import tpu as pltpu


# ----------------------------------------------------------------------------
# Glue: build the (input-independent) circuit unitaries with numpy
# ----------------------------------------------------------------------------
def _rot_matrix(phi, theta, omega):
    # qml.Rot(phi, theta, omega) = RZ(omega) @ RY(theta) @ RZ(phi)
    c = np.cos(theta / 2.0)
    s = np.sin(theta / 2.0)
    return np.array(
        [
            [np.exp(-0.5j * (phi + omega)) * c, -np.exp(0.5j * (phi - omega)) * s],
            [np.exp(0.5j * (phi - omega)) * s, np.exp(0.5j * (phi + omega)) * c],
        ],
        dtype=np.complex128,
    )


def _bit(state, wire, n_q):
    # PennyLane default.qubit: wire 0 is the most-significant bit of the basis index.
    return (state >> (n_q - 1 - wire)) & 1


def _sel_unitary(weights, n_q):
    """Full 2^n x 2^n unitary for qml.StronglyEntanglingLayers(weights, imprimitive=CZ).

    weights: (L, n_q, 3)
    """
    d = 2 ** n_q
    U = np.eye(d, dtype=np.complex128)
    L = weights.shape[0]
    for l in range(L):
        # per-wire Rot gates
        R = np.array([[1.0]], dtype=np.complex128)
        for j in range(n_q):
            R = np.kron(R, _rot_matrix(*weights[l, j]))
        U = R @ U
        # CZ entangler chain with range r = l % (n_q - 1) + 1
        if n_q > 1:
            r = l % (n_q - 1) + 1
            for j in range(n_q):
                a, b = j, (j + r) % n_q
                diag = np.ones(d, dtype=np.complex128)
                for s in range(d):
                    if _bit(s, a, n_q) and _bit(s, b, n_q):
                        diag[s] = -1.0
                U = diag[:, None] * U
    return U


def _complex_to_block(U):
    """(d, d) complex -> (2d, 2d) real block matrix acting on [Re; Im]."""
    return np.block([[U.real, -U.imag], [U.imag, U.real]]).astype(np.float32)


def _build_circuit_matrices(weights1, weights2, n_q):
    """Precompute everything that does not depend on the batch inputs."""
    d = 2 ** n_q
    n_layer = weights1.shape[0]
    U1 = np.stack([_sel_unitary(weights1[i], n_q) for i in range(n_layer)])  # (L, d, d)
    W2 = _sel_unitary(weights2, n_q)                                          # (d, d)

    # RZ(x_j) on wire j contributes a per-basis-state phase exp(i * x_j * (bit_j - 0.5)).
    S = np.zeros((n_q, d), dtype=np.float64)
    Z = np.zeros((d, n_q), dtype=np.float64)
    for j in range(n_q):
        for s in range(d):
            b = _bit(s, j, n_q)
            S[j, s] = b - 0.5
            Z[s, j] = 1.0 - 2.0 * b

    # Packed real forms used by the kernel.
    B1 = np.stack([_complex_to_block(U1[i]) for i in range(n_layer)])   # (L, 2d, 2d)
    B2 = _complex_to_block(W2)                                          # (2d, 2d)
    St = np.ascontiguousarray(S.T).astype(np.float32)                   # (d, n_q)
    Zt = np.concatenate([Z.T, Z.T], axis=1).astype(np.float32)          # (n_q, 2d)

    mats = (jnp.asarray(B1), jnp.asarray(B2), jnp.asarray(St), jnp.asarray(Zt))
    return mats, (U1, W2, S.astype(np.float32), Z.astype(np.float32))


# ----------------------------------------------------------------------------
# Pallas kernel: batched statevector evolution + <Z_i> readout (batch on lanes)
# ----------------------------------------------------------------------------
def _quantum_kernel(x_ref, b1_ref, b2_ref, st_ref, zt_ref, o_ref):
    # x_ref  : (n_q, TB)          input angles for this batch tile (transposed)
    # b1_ref : (n_layer, 2d, 2d)  packed [[Re,-Im],[Im,Re]] of SEL(weights1[i])
    # b2_ref : (2d, 2d)           packed form of SEL(weights2)
    # st_ref : (d, n_q)           RZ phase map transposed (ph = St @ x)
    # zt_ref : (n_q, 2d)          [Z^T, Z^T]  (PauliZ eigenvalues, tiled over re/im halves)
    # o_ref  : (n_q, TB)          expectation values <Z_i>, lane-dense
    tb = x_ref.shape[1]
    n_layer, d2, _ = b1_ref.shape
    d = d2 // 2

    # |0...0> initial state, batched: real amplitude of basis index 0 is 1.
    row = jax.lax.broadcasted_iota(jnp.int32, (d2, tb), 0)
    psi = jnp.where(row == 0, 1.0, 0.0).astype(jnp.float32)              # (2d, TB)

    # Diagonal RZ(x) phases (same diagonal re-applied every re-uploading layer).
    ph = jnp.dot(st_ref[...], x_ref[...], preferred_element_type=jnp.float32)  # (d, TB)
    cph = jnp.cos(ph)
    sph = jnp.sin(ph)
    cc = jnp.concatenate([cph, cph], axis=0)                             # (2d, TB)
    ss = jnp.concatenate([-sph, sph], axis=0)                            # (2d, TB)

    for l in range(n_layer):  # static unroll (n_layer is a compile-time constant)
        # one packed real matmul per layer: [r';i'] = B_l @ [r;i]
        psi = jnp.dot(b1_ref[l], psi, preferred_element_type=jnp.float32)
        # apply diagonal exp(i*ph): [c*r - s*i ; c*i + s*r]
        swapped = jnp.concatenate([psi[d:], psi[:d]], axis=0)
        psi = cc * psi + ss * swapped

    psi = jnp.dot(b2_ref[...], psi, preferred_element_type=jnp.float32)  # (2d, TB)

    probs2 = psi * psi                                                   # r^2 and i^2 halves
    o_ref[...] = jnp.dot(zt_ref[...], probs2, preferred_element_type=jnp.float32)


def quantum_layer_forward(x, mats, *, tile_b=256):
    """Equivalent of QuantumLayer.forward (use_noise == 0)."""
    B1, B2, St, Zt = mats
    n_q = x.shape[-1]
    n_layer, d2, _ = B1.shape
    orig_shape = x.shape

    xf = x.reshape(-1, n_q).astype(jnp.float32)
    B = xf.shape[0]
    # Pad the flattened batch up to a multiple of tile_b (padded columns discarded).
    B_pad = ((B + tile_b - 1) // tile_b) * tile_b
    xt = jnp.pad(xf.T, ((0, 0), (0, B_pad - B)))                          # (n_q, B_pad)

    out_t = pl.pallas_call(
        _quantum_kernel,
        out_shape=jax.ShapeDtypeStruct((n_q, B_pad), jnp.float32),
        grid_spec=pltpu.PrefetchScalarGridSpec(
            num_scalar_prefetch=0,
            grid=(B_pad // tile_b,),
            in_specs=[
                pl.BlockSpec((n_q, tile_b), lambda b: (0, b)),
                pl.BlockSpec((n_layer, d2, d2), lambda b: (0, 0, 0)),
                pl.BlockSpec((d2, d2), lambda b: (0, 0)),
                pl.BlockSpec((d2 // 2, n_q), lambda b: (0, 0)),
                pl.BlockSpec((n_q, d2), lambda b: (0, 0)),
            ],
            out_specs=pl.BlockSpec((n_q, tile_b), lambda b: (0, b)),
        ),
        compiler_params=pltpu.CompilerParams(dimension_semantics=("parallel",)),
    )(xt, B1, B2, St, Zt)

    out = out_t[:, :B].T                                                  # (B, n_q)
    return out.reshape(orig_shape)


# ----------------------------------------------------------------------------
# Pure numpy reference (same math, complex128) to validate the kernel
# ----------------------------------------------------------------------------
def _reference(xf, U1, W2, S, Z):
    B = xf.shape[0]
    d = W2.shape[0]
    n_q = S.shape[0]
    out = np.zeros((B, n_q), dtype=np.float64)
    for b in range(B):
        psi = np.zeros(d, dtype=np.complex128)
        psi[0] = 1.0
        diag = np.exp(1j * (xf[b].astype(np.float64) @ S.astype(np.float64)))
        for i in range(U1.shape[0]):
            psi = U1[i] @ psi
            psi = diag * psi
        psi = W2 @ psi
        out[b] = (np.abs(psi) ** 2) @ Z.astype(np.float64)
    return out


if __name__ == "__main__":
    # Module hyper-parameters
    in_features = 4        # number of qubits
    spectrum_layers = 2    # n_layer
    use_noise = 0
    # TODO(synk): use_noise != 0 applies batch-random RX rotations drawn with np.random at
    # call time; that non-deterministic path is not implemented (kernel covers use_noise == 0).

    # Deterministic parameter init (TorchLayer default: uniform in [0, 2*pi))
    key = jax.random.PRNGKey(0)
    k_w1, k_w2, k_x = jax.random.split(key, 3)
    weights1 = np.asarray(
        jax.random.uniform(k_w1, (spectrum_layers, 1, in_features, 3),
                           minval=0.0, maxval=2.0 * np.pi), dtype=np.float64)
    weights2 = np.asarray(
        jax.random.uniform(k_w2, (1, in_features, 3),
                           minval=0.0, maxval=2.0 * np.pi), dtype=np.float64)

    mats, (U1, W2, S_np, Z_np) = _build_circuit_matrices(weights1, weights2, in_features)

    # Example input: (batch=2, seq=8, in_features=4) -> exercises the reshape + padding path
    x = jax.random.uniform(k_x, (2, 8, in_features), minval=-np.pi, maxval=np.pi,
                           dtype=jnp.float32)

    out = quantum_layer_forward(x, mats, tile_b=256)
    out = jax.block_until_ready(out)

    # Sanity check against the plain numpy statevector reference
    ref = _reference(np.asarray(x).reshape(-1, in_features), U1, W2, S_np, Z_np)
    np.testing.assert_allclose(np.asarray(out).reshape(-1, in_features), ref,
                               rtol=1e-4, atol=1e-4)

    print("KERNEL_OK")
</pallas_src>

<mosaic_0001>
module attributes {stable_mosaic.version = 11 : i64} {
  func.func @_quantum_kernel(%arg0: i32, %arg1: memref<4x256xf32, #tpu.memory_space<vmem>>, %arg2: memref<2x32x32xf32, #tpu.memory_space<vmem>>, %arg3: memref<32x32xf32, #tpu.memory_space<vmem>>, %arg4: memref<16x4xf32, #tpu.memory_space<vmem>>, %arg5: memref<4x32xf32, #tpu.memory_space<vmem>>, %arg6: memref<4x256xf32, #tpu.memory_space<vmem>>) attributes {dimension_semantics = [#tpu.dimension_semantics<parallel>], iteration_bounds = array<i64: 1>, scalar_prefetch = 0 : i64, scratch_operands = 0 : i64, tpu.core_type = #tpu.core_type<tc>, window_params = [{transform_indices = @transform_0, window_bounds = array<i64: 4, 256>}, {pipeline_mode = #tpu.pipeline_mode<synchronous>, transform_indices = @transform_1, window_bounds = array<i64: 2, 32, 32>}, {pipeline_mode = #tpu.pipeline_mode<synchronous>, transform_indices = @transform_2, window_bounds = array<i64: 32, 32>}, {pipeline_mode = #tpu.pipeline_mode<synchronous>, transform_indices = @transform_3, window_bounds = array<i64: 16, 4>}, {pipeline_mode = #tpu.pipeline_mode<synchronous>, transform_indices = @transform_4, window_bounds = array<i64: 4, 32>}, {transform_indices = @transform_5, window_bounds = array<i64: 4, 256>}]} {
    %0 = tpu.iota {dimensions = array<i32: 0>} : vector<32x256xi32>
    %c0_i32 = arith.constant 0 : i32
    %1 = vector.broadcast %c0_i32 : i32 to vector<32x256xi32>
    %2 = arith.cmpi eq, %0, %1 : vector<32x256xi32>
    %cst = arith.constant 1.000000e+00 : f32
    %cst_0 = arith.constant 0.000000e+00 : f32
    %3 = vector.broadcast %cst : f32 to vector<32x256xf32>
    %4 = vector.broadcast %cst_0 : f32 to vector<32x256xf32>
    %5 = arith.select %2, %3, %4 : vector<32x256xi1>, vector<32x256xf32>
    %c0 = arith.constant 0 : index
    %c0_1 = arith.constant 0 : index
    %6 = vector.load %arg4[%c0, %c0_1] : memref<16x4xf32, #tpu.memory_space<vmem>>, vector<16x4xf32>
    %c0_2 = arith.constant 0 : index
    %c0_3 = arith.constant 0 : index
    %7 = vector.load %arg1[%c0_2, %c0_3] : memref<4x256xf32, #tpu.memory_space<vmem>>, vector<4x256xf32>
    %cst_4 = arith.constant dense<0.000000e+00> : vector<16x256xf32>
    %8 = tpu.matmul %6, %7, %cst_4 {dimension_numbers = #tpu.dot_dimension_numbers<[1], [0], [0], [1], [0, 0, 1, 1], [], []>} : vector<16x4xf32>, vector<4x256xf32>, vector<16x256xf32> -> vector<16x256xf32>
    %9 = math.cos %8 : vector<16x256xf32>
    %10 = math.sin %8 : vector<16x256xf32>
    %11 = tpu.concatenate %9, %9 in 0 : vector<16x256xf32>, vector<16x256xf32> -> vector<32x256xf32>
    %cst_5 = arith.constant 0.000000e+00 : f32
    %12 = vector.broadcast %cst_5 : f32 to vector<16x256xf32>
    %13 = arith.subf %12, %10 : vector<16x256xf32>
    %14 = tpu.concatenate %13, %10 in 0 : vector<16x256xf32>, vector<16x256xf32> -> vector<32x256xf32>
    %c0_6 = arith.constant 0 : index
    %c0_7 = arith.constant 0 : index
    %c0_8 = arith.constant 0 : index
    %15 = vector.load %arg2[%c0_6, %c0_7, %c0_8] : memref<2x32x32xf32, #tpu.memory_space<vmem>>, vector<1x32x32xf32>
    %16 = vector.shape_cast %15 : vector<1x32x32xf32> to vector<32x32xf32>
    %cst_9 = arith.constant dense<0.000000e+00> : vector<32x256xf32>
    %17 = tpu.matmul %16, %5, %cst_9 {dimension_numbers = #tpu.dot_dimension_numbers<[1], [0], [0], [1], [0, 0, 1, 1], [], []>} : vector<32x32xf32>, vector<32x256xf32>, vector<32x256xf32> -> vector<32x256xf32>
    %18 = vector.extract_strided_slice %17 {offsets = [16, 0], sizes = [16, 256], strides = [1, 1]} : vector<32x256xf32> to vector<16x256xf32>
    %19 = vector.extract_strided_slice %17 {offsets = [0, 0], sizes = [16, 256], strides = [1, 1]} : vector<32x256xf32> to vector<16x256xf32>
    %20 = tpu.concatenate %18, %19 in 0 : vector<16x256xf32>, vector<16x256xf32> -> vector<32x256xf32>
    %21 = arith.mulf %11, %17 : vector<32x256xf32>
    %22 = arith.mulf %14, %20 : vector<32x256xf32>
    %23 = arith.addf %21, %22 : vector<32x256xf32>
    %c1 = arith.constant 1 : index
    %c0_10 = arith.constant 0 : index
    %c0_11 = arith.constant 0 : index
    %24 = vector.load %arg2[%c1, %c0_10, %c0_11] : memref<2x32x32xf32, #tpu.memory_space<vmem>>, vector<1x32x32xf32>
    %25 = vector.shape_cast %24 : vector<1x32x32xf32> to vector<32x32xf32>
    %cst_12 = arith.constant dense<0.000000e+00> : vector<32x256xf32>
    %26 = tpu.matmul %25, %23, %cst_12 {dimension_numbers = #tpu.dot_dimension_numbers<[1], [0], [0], [1], [0, 0, 1, 1], [], []>} : vector<32x32xf32>, vector<32x256xf32>, vector<32x256xf32> -> vector<32x256xf32>
    %27 = vector.extract_strided_slice %26 {offsets = [16, 0], sizes = [16, 256], strides = [1, 1]} : vector<32x256xf32> to vector<16x256xf32>
    %28 = vector.extract_strided_slice %26 {offsets = [0, 0], sizes = [16, 256], strides = [1, 1]} : vector<32x256xf32> to vector<16x256xf32>
    %29 = tpu.concatenate %27, %28 in 0 : vector<16x256xf32>, vector<16x256xf32> -> vector<32x256xf32>
    %30 = arith.mulf %11, %26 : vector<32x256xf32>
    %31 = arith.mulf %14, %29 : vector<32x256xf32>
    %32 = arith.addf %30, %31 : vector<32x256xf32>
    %c0_13 = arith.constant 0 : index
    %c0_14 = arith.constant 0 : index
    %33 = vector.load %arg3[%c0_13, %c0_14] : memref<32x32xf32, #tpu.memory_space<vmem>>, vector<32x32xf32>
    %cst_15 = arith.constant dense<0.000000e+00> : vector<32x256xf32>
    %34 = tpu.matmul %33, %32, %cst_15 {dimension_numbers = #tpu.dot_dimension_numbers<[1], [0], [0], [1], [0, 0, 1, 1], [], []>} : vector<32x32xf32>, vector<32x256xf32>, vector<32x256xf32> -> vector<32x256xf32>
    %35 = arith.mulf %34, %34 : vector<32x256xf32>
    %c0_16 = arith.constant 0 : index
    %c0_17 = arith.constant 0 : index
    %36 = vector.load %arg5[%c0_16, %c0_17] : memref<4x32xf32, #tpu.memory_space<vmem>>, vector<4x32xf32>
    %cst_18 = arith.constant dense<0.000000e+00> : vector<4x256xf32>
    %37 = tpu.matmul %36, %35, %cst_18 {dimension_numbers = #tpu.dot_dimension_numbers<[1], [0], [0], [1], [0, 0, 1, 1], [], []>} : vector<4x32xf32>, vector<32x256xf32>, vector<4x256xf32> -> vector<4x256xf32>
    %c0_19 = arith.constant 0 : index
    %c0_20 = arith.constant 0 : index
    %38 = vector.load %arg6[%c0_19, %c0_20] : memref<4x256xf32, #tpu.memory_space<vmem>>, vector<4x256xf32>
    tpu.vector_store %arg6[%c0_19, %c0_20], %37 {strides = array<i32>} : memref<4x256xf32, #tpu.memory_space<vmem>>, vector<4x256xf32>,
    return
  }
  func.func @transform_0(%arg0: i32) -> (i32, i32) {
    %c0_i32 = arith.constant 0 : i32
    %c0_i32_0 = arith.constant 0 : i32
    return %c0_i32, %arg0 : i32, i32
  }
  func.func @transform_1(%arg0: i32) -> (i32, i32, i32) {
    %c0_i32 = arith.constant 0 : i32
    %c0_i32_0 = arith.constant 0 : i32
    %c0_i32_1 = arith.constant 0 : i32
    %c0_i32_2 = arith.constant 0 : i32
    return %c0_i32, %c0_i32_0, %c0_i32_1 : i32, i32, i32
  }
  func.func @transform_2(%arg0: i32) -> (i32, i32) {
    %c0_i32 = arith.constant 0 : i32
    %c0_i32_0 = arith.constant 0 : i32
    %c0_i32_1 = arith.constant 0 : i32
    return %c0_i32, %c0_i32_0 : i32, i32
  }
  func.func @transform_3(%arg0: i32) -> (i32, i32) {
    %c0_i32 = arith.constant 0 : i32
    %c0_i32_0 = arith.constant 0 : i32
    %c0_i32_1 = arith.constant 0 : i32
    return %c0_i32, %c0_i32_0 : i32, i32
  }
  func.func @transform_4(%arg0: i32) -> (i32, i32) {
    %c0_i32 = arith.constant 0 : i32
    %c0_i32_0 = arith.constant 0 : i32
    %c0_i32_1 = arith.constant 0 : i32
    return %c0_i32, %c0_i32_0 : i32, i32
  }
  func.func @transform_5(%arg0: i32) -> (i32, i32) {
    %c0_i32 = arith.constant 0 : i32
    %c0_i32_0 = arith.constant 0 : i32
    return %c0_i32, %arg0 : i32, i32
  }
}

</mosaic_0001>

<bundles_post_ra>
// kernel: tpu_custom_call.1
= control target key start
LH: loop header
LB: loop body
LE: loop exit
PB: predicated region body
PF: predicated region fallthrough
CT: control target
= control target key end

     0   :  { %10 = vsyncpa [#allocation3], 0  ;;  %s2146_s0 = inlined_call_operand.vmem [shape: f32[4,256], index: 0, kind: input, shape index: {}]   ;;  %s2147_s1 = inlined_call_operand.hbm [shape: f32[2,32,32], index: 1, kind: input, shape index: {}]   ;;  %s2148_s2 = inlined_call_operand.hbm [shape: f32[32,32], index: 2, kind: input, shape index: {}]   ;;  %s2149_s3 = inlined_call_operand.vmem [shape: f32[16,4], index: 3, kind: input, shape index: {}]   ;;  %s2150_s4 = inlined_call_operand.vmem [shape: f32[4,32], index: 4, kind: input, shape index: {}]   ;;  %s2151_s5 = inlined_call_operand.hbm [shape: f32[4,256], index: 5, kind: output, shape index: {}]  }
   0x1   :  { %11 = vsyncpa [#allocation6], 0 }
   0x2   :  { %12 = vsyncpa [#allocation4], 0  ;;  %s1650_s18 = smov [#allocation2]   ;;  %s1578_s22 = scalar_lea.hbm %s2147_s1, 1024 }
   0x3   :  { %s20_s19 = sshll.u32 %s1650_s18, 4  ;;  %p1579_p0 = scmp.ne.s32.totalorder %s2147_s1, %s1578_s22  ;;  %s21_s19 = int_to_ptr.vmem [resolvable:$true] %s20_s19 }
   0x4   :  { %p1582_p1 = scmp.lt.u32.totalorder %s1578_s22, %s2147_s1 }
   0x6   :  { %p1584_p2 = pnand %p1582_p1, %p1579_p0 }
   0x8   :  { %1587 = shalt.err (!%p1584_p2)
}
   0x9   :  { %s1588_s27 = scalar_lea.vmem %s21_s19, 1024  ;;  %p1593_p4 = scmp.lt.s32.totalorder %s21_s19, %s21_s19 }
   0xa   :  { %p1589_p3 = scmp.ne.s32.totalorder %s21_s19, %s1588_s27  ;;  %p1594_p5 = scmp.lt.s32.totalorder %s1588_s27, %s1588_s27 }
   0xc   :  { %p1595_p6 = por %p1594_p5, %p1593_p4 }
   0xe   :  { %p1596_p7 = pnand %p1595_p6, %p1589_p3 }
  0x10   :  { %1599 = shalt.err (!%p1596_p7)
}
  0x11   :  { %s1651_s28 = smov 128   ;;  %s1652_s29 = smov 8  }
  0x12   :  { %26 = dma.hbm_to_vmem [thread:$0]  %s2147_s1, 1024, %s21_s19, [#allocation3], %s1651_s28, %s1651_s28, %s1652_s29  }
  0x13   :  { %s1653_s7 = smov [#allocation5]   ;;  %s1600_s11 = scalar_lea.hbm %s2148_s2, 512 }
  0x14   :  { %s32_s8 = sshll.u32 %s1653_s7, 4  ;;  %p1601_p8 = scmp.ne.s32.totalorder %s2148_s2, %s1600_s11  ;;  %s33_s8 = int_to_ptr.vmem [resolvable:$true] %s32_s8 }
  0x15   :  { %p1604_p9 = scmp.lt.u32.totalorder %s1600_s11, %s2148_s2 }
  0x17   :  { %p1606_p10 = pnand %p1604_p9, %p1601_p8 }
  0x19   :  { %1609 = shalt.err (!%p1606_p10)
}
  0x1a   :  { %s1610_s16 = scalar_lea.vmem %s33_s8, 512  ;;  %p1615_p12 = scmp.lt.s32.totalorder %s33_s8, %s33_s8 }
  0x1b   :  { %p1611_p11 = scmp.ne.s32.totalorder %s33_s8, %s1610_s16  ;;  %p1616_p13 = scmp.lt.s32.totalorder %s1610_s16, %s1610_s16 }
  0x1d   :  { %p1617_p0 = por %p1616_p13, %p1615_p12 }
  0x1f   :  { %p1618_p1 = pnand %p1617_p0, %p1611_p11 }
  0x21   :  { %1621 = shalt.err (!%p1618_p1)
}
  0x22   :  { %38 = dma.hbm_to_vmem [thread:$0]  %s2148_s2, 512, %s33_s8, [#allocation6], %s1651_s28, %s1651_s28, %s1652_s29  }
  0x23   :  { %1644 = dma.done.wait [#allocation3], 1024  }
  0x24   :  { %1645 = vsyncadd [#allocation3], 4294966272 }
  0x25   :  { %1646 = dma.done.wait [#allocation6], 512  }
  0x26   :  { %1647 = vsyncadd [#allocation6], 4294966784  ;;  %v49_v0 = vlaneseq  ;;  %v1654_v1 = vmov 0.0   ;;  %v1655_v3 = vmov 1.0   ;;  %vm992_vm1 = vcmask 261120   ;;  %v64_v4 = vld [vmem:[%s2146_s0] sm:$0xff] }
  0x27   :  { %143 = vmatprep.mubr.f32.mxu0 %v1654_v1  ;;  %1069 = vmatprep.mubr.f32.mxu1 %v1654_v1  ;;  %vm74_vm2 = vcmask 1043456   ;;  %v66_v5 = vcombine.high %v64_v4, %v64_v4  ;;  %v988_v6 = vld [vmem:[#allocation2] sm:$0xff]  ;;  %vm67_vm3 = vcmask 31744   ;;  %v989_v8 = vld [vmem:[#allocation2 + $0x8] sm:$0xff]  ;;  %v990_v10 = vld [vmem:[#allocation2 + $0x10] sm:$0xff]  ;;  %s1662_s23 = smov [#allocation7]  }
  0x28   :  { %v50_v2 = vshrl.u32 %v49_v0, 7  ;;  %v62_v7 = vld [vmem:[%s2149_s3] sm:$0xff]  ;;  %v63_v9 = vld [vmem:[%s2149_s3 + $0x8] sm:$0xff]  ;;  %v991_v11 = vld [vmem:[#allocation2 + $0x18] sm:$0xff]  ;;  %v1656_v51 = vmov 683565275  }
  0x29   :  { %1457 = vmatprep.subr.msk.mxu0 %vm74_vm2, %v66_v5  ;;  %v1657_v55 = vmov 2475754826   ;;  %v1658_v57 = vmov 2131351028   ;;  %v1659_v59 = vmov 2102212464  }
  0x2a   :  { %vm54_vm0 = vcmp.eq.s32.totalorder %v50_v2, 0  ;;  %1458 = vmatpush1.msk.msra.mxu0 %vm74_vm2, %v64_v4  ;;  %v1660_v61 = vmov 920167782   ;;  %v1661_v5 = vmov 1326507024   ;;  %s1447_s24 = sshll.u32 %s1662_s23, 4  ;;  %s1448_s24 = int_to_ptr.vmem [resolvable:$true] %s1447_s24 }
  0x2b   :  { %1493 = vmatprep.subr.msk.mxu1 %vm54_vm0, %v1655_v3  ;;  %1459 = vmatmul.mubr.msk.f32.vlgmr.msra.gmra.mrb[0].mxu0 %vm67_vm3, %v62_v7  ;;  %s1622_s25 = scalar_lea.vmem %s1448_s24, 128  ;;  %p1627_p3 = scmp.lt.s32.totalorder %s1448_s24, %s1448_s24 }
  0x2c   :  { %1494 = vmatpush1.msk.msra.mxu1 %vm54_vm0, %v1655_v3  ;;  %149 = vmatprep.mubr.f32.mxu0 %v1654_v1  ;;  %p1623_p2 = scmp.ne.s32.totalorder %s1448_s24, %s1622_s25  ;;  %p1628_p4 = scmp.lt.s32.totalorder %s1622_s25, %s1622_s25 }
  0x2d   :  { %1495 = vmatmul.mubr.msk.f32.vlgmr.msra.gmra.mrb[0].mxu1 %vm992_vm1, %v988_v6 }
  0x2e   :  { %1075 = vmatprep.mubr.f32.mxu1 %v1654_v1  ;;  %p1629_p5 = por %p1628_p4, %p1627_p3 }
  0x2f   :  { %1460 = vmatmul.mubr.msk.f32.gmra.mrb[2].mxu0 %vm67_vm3, %v63_v9 }
  0x30   :  { %1199 = vmatprep.mubr.f32.mxu0 %v1654_v1  ;;  %p1630_p6 = pnand %p1629_p5, %p1623_p2 }
  0x31   :  { %1496 = vmatmul.mubr.msk.f32.gmra.mrb[2].mxu1 %vm992_vm1, %v989_v8 }
  0x32   :  { %1081 = vmatprep.mubr.f32.mxu1 %v1654_v1 }
  0x35   :  { %1497 = vmatmul.mubr.msk.f32.gmra.mrb[4].mxu1 %vm992_vm1, %v990_v10 }
  0x36   :  { %1087 = vmatprep.mubr.f32.mxu1 %v1654_v1 }
  0x39   :  { %1498 = vmatmul.mubr.msk.f32.gmra.mrb[6].mxu1 %vm992_vm1, %v991_v11 }
  0x3a   :  { %1328 = vmatprep.mubr.f32.mxu1 %v1654_v1 }
  0xfe   :  { %v1742_v14 = vpop.f32.mrb[0].mxu0 }
  0xff   :  { %v156_v15 = vand.u32 2147483647, %v1742_v14  ;;  %v159_v16 = vand.u32 2139095040, %v1742_v14  ;;  %v1746_v17 = vpop.f32.mrb[1].mxu0 }
 0x100   :  { %v1738_v12 = vpop.f32.mrb[0].mxu1  ;;  %v259_v19 = vand.u32 2147483647, %v1746_v17  ;;  %v262_v20 = vand.u32 2139095040, %v1746_v17 }
 0x101   :  { %v1740_v13 = vpop.f32.mrb[1].mxu1  ;;  %v160_v22 = vshrl.u32 %v159_v16, 23  ;;  %v163_v23 = vand.u32 8388607, %v156_v15 }
 0x102   :  { %v263_v24 = vshrl.u32 %v262_v20, 23  ;;  %v266_v25 = vand.u32 8388607, %v259_v19  ;;  %v1758_v26 = vpop.f32.mrb[2].mxu0 }
 0x103   :  { %v1461_v27 = vadd.s32 4294967169, %v160_v22  ;;  %v1760_v28 = vpop.f32.mrb[3].mxu0  ;;  %v365_v30 = vand.u32 2139095040, %v1758_v26  ;;  %v164_v32 = vor.u32 8388608, %v163_v23  ;;  %v362_v36 = vand.u32 2147483647, %v1758_v26 }
 0x104   :  { %v1748_v18 = vpop.f32.mrb[2].mxu1  ;;  %v1465_v29 = vadd.s32 4294967169, %v263_v24  ;;  %v267_v34 = vor.u32 8388608, %v266_v25 }
 0x105   :  { %v1752_v21 = vpop.f32.mrb[3].mxu1  ;;  %v166_v33 = vadd.s32 1, %v1461_v27  ;;  %v366_v37 = vshrl.u32 %v365_v30, 23  ;;  %v1772_v46 = vshll.u32 %v164_v32, 8  ;;  %v1780_v49 = vand.u32 8388607, %v362_v36 }
 0x106   :  { %v269_v35 = vadd.s32 1, %v1465_v29  ;;  %v1776_v48 = vshll.u32 %v267_v34, 8 }
 0x107   :  { %vm167_vm4 = vcmp.gt.s32.totalorder %v166_v33, 0  ;;  %v1469_v41 = vadd.s32 4294967169, %v366_v37 }
 0x108   :  { %v1763_v31 = vpop.f32.mrb[4].mxu1  ;;  %v168_v40 = vsel %vm167_vm4, %v166_v33, 0  ;;  %vm270_vm5 = vcmp.gt.s32.totalorder %v269_v35, 0 }
 0x109   :  { %v1766_v38 = vpop.f32.mrb[5].mxu1  ;;  %v169_v43 = vshrl.u32 %v168_v40, 5  ;;  %v170_v44 = vand.u32 31, %v168_v40  ;;  %v271_v45 = vsel %vm270_vm5, %v269_v35, 0  ;;  %v1783_v54 = vadd.s32 1, %v1469_v41 }
 0x10a   :  { %v1774_v47 = vshrl.u32 %v271_v45, 5  ;;  %v273_v53 = vand.u32 31, %v271_v45  ;;  %vm158_vm5 = vcmp.lt.s32.totalorder %v1742_v14, 0 }
 0x10b   :  { %v171_v50 = vsub.s32 32, %v170_v44  ;;  %v173_v52 = vshll.u32 %v1656_v51, %v170_v44  ;;  %v176_v56 = vshll.u32 %v1657_v55, %v170_v44  ;;  %v179_v58 = vshll.u32 %v1658_v57, %v170_v44 }
 0x10c   :  { %v1768_v39 = vpop.f32.mrb[6].mxu1  ;;  %v182_v60 = vshll.u32 %v1659_v59, %v170_v44  ;;  %v185_v62 = vshll.u32 %v1660_v61, %v170_v44  ;;  %vm188_vm6 = vcmp.lt.s32.totalorder %v169_v43, 1  ;;  %vm189_vm7 = vcmp.lt.s32.totalorder %v169_v43, 2 }
 0x10d   :  { %v1770_v42 = vpop.f32.mrb[7].mxu1  ;;  %v174_v63 = vshrl.u32 %v1657_v55, %v171_v50  ;;  %v177_v0 = vshrl.u32 %v1658_v57, %v171_v50  ;;  %v180_v2 = vshrl.u32 %v1659_v59, %v171_v50  ;;  %v172_v3 = vshrl.u32 %v1656_v51, %v171_v50 }
 0x10e   :  { %v183_v4 = vshrl.u32 %v1660_v61, %v171_v50  ;;  %v186_v6 = vshrl.u32 %v1661_v5, %v171_v50  ;;  %v274_v10 = vsub.s32 32, %v273_v53  ;;  %vm190_vm8 = vcmp.lt.s32.totalorder %v169_v43, 3 }
 0x10f   :  { %v175_v7 = vor.u32 %v174_v63, %v173_v52  ;;  %v178_v8 = vor.u32 %v177_v0, %v176_v56  ;;  %v181_v9 = vor.u32 %v180_v2, %v179_v58  ;;  %vm191_vm9 = vcmp.lt.s32.totalorder %v169_v43, 4 }
 0x110   :  { %v184_v11 = vor.u32 %v183_v4, %v182_v60  ;;  %v187_v16 = vor.u32 %v186_v6, %v185_v62  ;;  %v276_v30 = vshll.u32 %v1656_v51, %v273_v53  ;;  %v277_v34 = vshrl.u32 %v1657_v55, %v274_v10 }
 0x111   :  { %v192_v20 = vsel %vm188_vm6, %v172_v3, %v175_v7  ;;  %v193_v22 = vsel %vm191_vm9, %v181_v9, 2102212464  ;;  %v196_v23 = vsel %vm188_vm6, %v175_v7, %v178_v8  ;;  %v200_v24 = vsel %vm188_vm6, %v178_v8, %v181_v9 }
 0x112   :  { %v194_v25 = vsel %vm190_vm8, %v178_v8, %v193_v22  ;;  %v197_v27 = vsel %vm191_vm9, %v184_v11, 920167782  ;;  %v201_v29 = vsel %vm191_vm9, %v187_v16, 1326507024  ;;  %v279_v35 = vshll.u32 %v1657_v55, %v273_v53 }
 0x113   :  { %v198_v32 = vsel %vm190_vm8, %v181_v9, %v197_v27  ;;  %v202_v33 = vsel %vm190_vm8, %v184_v11, %v201_v29  ;;  %v195_v37 = vsel %vm189_vm7, %v192_v20, %v194_v25  ;;  %v280_v44 = vshrl.u32 %v1658_v57, %v274_v10 }
 0x114   :  { %v199_v40 = vsel %vm189_vm7, %v196_v23, %v198_v32  ;;  %v203_v41 = vsel %vm189_vm7, %v200_v24, %v202_v33  ;;  %v278_v58 = vor.u32 %v277_v34, %v276_v30  ;;  %v282_v62 = vshll.u32 %v1658_v57, %v273_v53 }
 0x115   :  { %v1806_v45 = vmul.u32.u64.low %v1772_v46, %v203_v41  ;;  %v1807_v50 = vmul.u32.u64.high %v1772_v46, %v203_v41, %v1806_v45  ;;  %v1810_v52 = vmul.u32.u64.low %v1772_v46, %v199_v40  ;;  %v1811_v56 = vmul.u32.u64.high %v1772_v46, %v199_v40, %v1810_v52 }
 0x116   :  { %v281_v60 = vor.u32 %v280_v44, %v279_v35  ;;  %v283_v63 = vshrl.u32 %v1659_v59, %v274_v10  ;;  %v275_v43 = vshrl.u32 %v1656_v51, %v274_v10  ;;  %v285_v0 = vshll.u32 %v1659_v59, %v273_v53 }
 0x117   :  { %v286_v2 = vshrl.u32 %v1660_v61, %v274_v10  ;;  %v289_v3 = vshrl.u32 %v1661_v5, %v274_v10  ;;  %v211_v4 = vmul.u32 %v1772_v46, %v195_v37  ;;  %v288_v7 = vshll.u32 %v1660_v61, %v273_v53 }
 0x118   :  { %v284_v6 = vor.u32 %v283_v63, %v282_v62  ;;  %vm291_vm10 = vcmp.lt.s32.totalorder %v1774_v47, 1  ;;  %vm213_vm11 = vc.u32 %v1807_v50, %v1810_v52  ;;  %v214_v8 = vadd.s32 1, %v1811_v56 }
 0x119   :  { %v287_v9 = vor.u32 %v286_v2, %v285_v0  ;;  %vm292_vm12 = vcmp.lt.s32.totalorder %v1774_v47, 2  ;;  %v290_v11 = vor.u32 %v289_v3, %v288_v7  ;;  %vm293_vm13 = vcmp.lt.s32.totalorder %v1774_v47, 3 }
 0x11a   :  { %vm294_vm14 = vcmp.lt.s32.totalorder %v1774_v47, 4  ;;  %v299_v10 = vsel %vm291_vm10, %v278_v58, %v281_v60  ;;  %v215_v46 = vsel %vm213_vm11, %v214_v8, %v1811_v56  ;;  %v303_v20 = vsel %vm291_vm10, %v281_v60, %v284_v6 }
 0x11b   :  { %v296_v16 = vsel %vm294_vm14, %v284_v6, 2102212464  ;;  %v300_v53 = vsel %vm294_vm14, %v287_v9, 920167782  ;;  %v216_v22 = vadd.s32 %v215_v46, %v211_v4  ;;  %v295_v23 = vsel %vm291_vm10, %v275_v43, %v278_v58 }
 0x11c   :  { %v301_v24 = vsel %vm293_vm13, %v284_v6, %v300_v53  ;;  %v304_v25 = vsel %vm294_vm14, %v290_v11, 1326507024  ;;  %v297_v27 = vsel %vm293_vm13, %v281_v60, %v296_v16  ;;  %vm373_vm15 = vcmp.gt.s32.totalorder %v1783_v54, 0 }
 0x11d   :  { %v302_v29 = vsel %vm292_vm12, %v299_v10, %v301_v24  ;;  %v305_v30 = vsel %vm293_vm13, %v287_v9, %v304_v25  ;;  %v217_v32 = vadd.s32 536870912, %v216_v22  ;;  %v374_v41 = vsel %vm373_vm15, %v1783_v54, 0 }
 0x11e   :  { %v306_v33 = vsel %vm292_vm12, %v303_v20, %v305_v30  ;;  %v1836_v34 = vmul.u32.u64.low %v1776_v48, %v302_v29  ;;  %v1837_v35 = vmul.u32.u64.high %v1776_v48, %v302_v29, %v1836_v34  ;;  %v465_v44 = vand.u32 2147483647, %v1760_v28 }
 0x11f   :  { %v1841_v37 = vmul.u32.u64.low %v1776_v48, %v306_v33  ;;  %v1842_v40 = vmul.u32.u64.high %v1776_v48, %v306_v33, %v1841_v37  ;;  %v1846_v45 = vshrl.u32 %v217_v32, 30  ;;  %v298_v56 = vsel %vm292_vm12, %v295_v23, %v297_v27 }
 0x120   :  { %v370_v58 = vor.u32 8388608, %v1780_v49  ;;  %v376_v60 = vand.u32 31, %v374_v41  ;;  %v317_v63 = vadd.s32 1, %v1837_v35  ;;  %v468_v0 = vand.u32 2139095040, %v1760_v28 }
 0x121   :  { %v219_v62 = vshll.u32 %v1846_v45, 30  ;;  %v314_v2 = vmul.u32 %v1776_v48, %v298_v56  ;;  %vm316_vm0 = vc.u32 %v1842_v40, %v1836_v34  ;;  %v1864_v49 = vand.u32 8388607, %v465_v44 }
 0x122   :  { %v377_v43 = vsub.s32 32, %v376_v60  ;;  %v318_v47 = vsel %vm316_vm0, %v317_v63, %v1837_v35  ;;  %v1860_v3 = vshll.u32 %v370_v58, 8  ;;  %v379_v6 = vshll.u32 %v1656_v51, %v376_v60 }
 0x123   :  { %v1857_v54 = vsub.s32 %v216_v22, %v219_v62  ;;  %v319_v4 = vadd.s32 %v318_v47, %v314_v2  ;;  %v382_v9 = vshll.u32 %v1657_v55, %v376_v60  ;;  %v469_v10 = vshrl.u32 %v468_v0, 23 }
 0x124   :  { %v380_v7 = vshrl.u32 %v1657_v55, %v377_v43  ;;  %v383_v48 = vshrl.u32 %v1658_v57, %v377_v43  ;;  %v386_v11 = vshrl.u32 %v1659_v59, %v377_v43  ;;  %v375_v16 = vshrl.u32 %v374_v41, 5 }
 0x125   :  { %v222_v8 = vsub.s32 0, %v1857_v54  ;;  %v320_v46 = vadd.s32 536870912, %v319_v4  ;;  %v385_v20 = vshll.u32 %v1658_v57, %v376_v60  ;;  %v388_v24 = vshll.u32 %v1659_v59, %v376_v60 }
 0x126   :  { %v381_v53 = vor.u32 %v380_v7, %v379_v6  ;;  %v384_v23 = vor.u32 %v383_v48, %v382_v9  ;;  %v389_v25 = vshrl.u32 %v1660_v61, %v377_v43  ;;  %v212_v27 = vadd.s32 %v1810_v52, %v1807_v50 }
 0x127   :  { %v1462_v22 = vmin.u32 %v222_v8, %v1857_v54  ;;  %v1878_v29 = vshrl.u32 %v320_v46, 30  ;;  %v387_v30 = vor.u32 %v386_v11, %v385_v20  ;;  %v392_v32 = vshrl.u32 %v1661_v5, %v377_v43 }
 0x128   :  { %v378_v35 = vshrl.u32 %v1656_v51, %v377_v43  ;;  %v390_v37 = vor.u32 %v389_v25, %v388_v24  ;;  %v391_v41 = vshll.u32 %v1660_v61, %v376_v60  ;;  %vm394_vm2 = vcmp.lt.s32.totalorder %v375_v16, 1 }
 0x129   :  { %v224_v33 = vclz %v1462_v22  ;;  %v322_v56 = vshll.u32 %v1878_v29, 30  ;;  %vm396_vm3 = vcmp.lt.s32.totalorder %v375_v16, 3  ;;  %vm397_vm4 = vcmp.lt.s32.totalorder %v375_v16, 4 }
 0x12a   :  { %v393_v62 = vor.u32 %v392_v32, %v391_v41  ;;  %v402_v50 = vsel %vm394_vm2, %v381_v53, %v384_v23  ;;  %v403_v52 = vsel %vm397_vm4, %v390_v37, 920167782  ;;  %vm395_vm6 = vcmp.lt.s32.totalorder %v375_v16, 2 }
 0x12b   :  { %v1463_v58 = vadd.s32 4294967294, %v224_v33  ;;  %v1887_v63 = vsub.s32 %v319_v4, %v322_v56  ;;  %v399_v43 = vsel %vm397_vm4, %v387_v30, 2102212464  ;;  %v404_v60 = vsel %vm396_vm3, %v387_v30, %v403_v52 }
 0x12c   :  { %v242_v0 = vsub.s32 4, %v1846_v45  ;;  %v405_v2 = vsel %vm395_vm6, %v402_v50, %v404_v60  ;;  %v1473_v47 = vadd.s32 4294967169, %v469_v10  ;;  %v398_v48 = vsel %vm394_vm2, %v378_v35, %v381_v53 }
 0x12d   :  { %vm1464_vm7 = vcmp.lt.s32.totalorder %v1463_v58, 0  ;;  %v325_v7 = vsub.s32 0, %v1887_v63  ;;  %v406_v8 = vsel %vm394_vm2, %v384_v23, %v387_v30  ;;  %v400_v11 = vsel %vm396_vm3, %v384_v23, %v399_v43 }
 0x12e   :  { %v227_v6 = vsel %vm1464_vm7, 0, %v1463_v58  ;;  %v407_v46 = vsel %vm397_vm4, %v393_v62, 1326507024  ;;  %vm261_vm8 = vcmp.lt.s32.totalorder %v1746_v17, 0  ;;  %v475_v41 = vadd.s32 1, %v1473_v47 }
 0x12f   :  { %v228_v4 = vsub.s32 32, %v227_v6  ;;  %v232_v9 = vsub.s32 4294967266, %v227_v6  ;;  %v1466_v20 = vmin.u32 %v325_v7, %v1887_v63  ;;  %v408_v22 = vsel %vm396_vm3, %v390_v37, %v407_v46 }
 0x130   :  { %v1902_v10 = vmul.u32.u64.low %v1860_v3, %v405_v2  ;;  %v1903_v24 = vmul.u32.u64.high %v1860_v3, %v405_v2, %v1902_v10  ;;  %v229_v53 = vshll.u32 %v1857_v54, %v227_v6  ;;  %v409_v32 = vsel %vm395_vm6, %v406_v8, %v408_v22 }
 0x131   :  { %v230_v25 = vshrl.u32 %v212_v27, %v228_v4  ;;  %v233_v30 = vadd.s32 127, %v232_v9  ;;  %v327_v23 = vclz %v1466_v20  ;;  %vm1914_vm9 = vcmp.le.f32.partialorder %v156_v15, 0.7853982 }
 0x132   :  { %v1909_v33 = vmul.u32.u64.low %v1860_v3, %v409_v32  ;;  %v1910_v35 = vmul.u32.u64.high %v1860_v3, %v409_v32, %v1909_v33  ;;  %v401_v54 = vsel %vm395_vm6, %v398_v48, %v400_v11  ;;  %v420_v62 = vadd.s32 1, %v1903_v24 }
 0x133   :  { %v231_v56 = vor.u32 %v230_v25, %v229_v53  ;;  %v234_v58 = vshll.u32 %v233_v30, 23  ;;  %v1467_v27 = vadd.s32 4294967294, %v327_v23  ;;  %v473_v50 = vor.u32 8388608, %v1864_v49 }
 0x134   :  { %vm476_vm10 = vcmp.gt.s32.totalorder %v475_v41, 0  ;;  %v243_v43 = vsel %vm158_vm5, %v242_v0, %v1846_v45  ;;  %v345_v15 = vsub.s32 4, %v1878_v29  ;;  %v417_v47 = vmul.u32 %v1860_v3, %v401_v54 }
 0x135   :  { %v235_v52 = vor.u32 4788187, %v234_v58  ;;  %v477_v60 = vsel %vm476_vm10, %v475_v41, 0  ;;  %v238_v2 = vcvt.s32.f32 %v231_v56  ;;  %vm1468_vm11 = vcmp.lt.s32.totalorder %v1467_v27, 0 }
 0x136   :  { %vm419_vm12 = vc.u32 %v1910_v35, %v1902_v10  ;;  %v330_v6 = vsel %vm1468_vm11, 0, %v1467_v27  ;;  %v479_v7 = vand.u32 31, %v477_v60  ;;  %v315_v48 = vadd.s32 %v1836_v34, %v1842_v40 }
 0x137   :  { %v236_v16 = vand.u32 2147483647, %v235_v52  ;;  %v421_v49 = vsel %vm419_vm12, %v420_v62, %v1903_v24  ;;  %v331_v8 = vsub.s32 32, %v330_v6  ;;  %v335_v45 = vsub.s32 4294967266, %v330_v6 }
 0x138   :  { %v422_v0 = vadd.s32 %v421_v49, %v417_v47  ;;  %v1933_v9 = vsel %vm1914_vm9, 0, %v243_v43  ;;  %v1938_v3 = vsel %vm261_vm8, %v345_v15, %v1878_v29  ;;  %v480_v11 = vsub.s32 32, %v479_v7 }
 0x139   :  { %v239_v4 = vmul.f32 %v238_v2, %v236_v16  ;;  %v332_v46 = vshll.u32 %v1887_v63, %v330_v6  ;;  %v333_v20 = vshrl.u32 %v315_v48, %v331_v8  ;;  %v336_v22 = vadd.s32 127, %v335_v45 }
 0x13a   :  { %v423_v24 = vadd.s32 536870912, %v422_v0  ;;  %v478_v40 = vshrl.u32 %v477_v60, 5  ;;  %v482_v53 = vshll.u32 %v1656_v51, %v479_v7  ;;  %v483_v25 = vshrl.u32 %v1657_v55, %v480_v11 }
 0x13b   :  { %v240_v34 = vxor.u32 2147483648, %v239_v4  ;;  %v334_v30 = vor.u32 %v333_v20, %v332_v46  ;;  %v337_v32 = vshll.u32 %v336_v22, 23  ;;  %v489_v33 = vshrl.u32 %v1659_v59, %v480_v11 }
 0x13c   :  { %v1943_v23 = vshrl.u32 %v423_v24, 30  ;;  %v485_v63 = vshll.u32 %v1657_v55, %v479_v7  ;;  %v486_v41 = vshrl.u32 %v1658_v57, %v480_v11  ;;  %v488_v56 = vshll.u32 %v1658_v57, %v479_v7 }
 0x13d   :  { %v241_v29 = vsel %vm158_vm5, %v240_v34, %v239_v4  ;;  %vm1956_vm13 = vcmp.le.f32.partialorder %v259_v19, 0.7853982  ;;  %v338_v27 = vor.u32 4788187, %v337_v32  ;;  %v484_v52 = vor.u32 %v483_v25, %v482_v53 }
 0x13e   :  { %v244_v58 = vsel %vm1914_vm9, %v1742_v14, %v241_v29  ;;  %v425_v62 = vshll.u32 %v1943_v23, 30  ;;  %v341_v55 = vcvt.s32.f32 %v334_v30  ;;  %v491_v43 = vshll.u32 %v1659_v59, %v479_v7 }
 0x13f   :  { %1562 = vcosq.f32 %v244_v58  ;;  %v492_v57 = vshrl.u32 %v1660_v61, %v480_v11  ;;  %v339_v15 = vand.u32 2147483647, %v338_v27  ;;  %v490_v60 = vor.u32 %v489_v33, %v488_v56 }
 0x140   :  { %1564 = vsinq.f32 %v244_v58  ;;  %v1963_v37 = vsub.s32 %v422_v0, %v425_v62  ;;  %v487_v2 = vor.u32 %v486_v41, %v485_v63  ;;  %v494_v47 = vshll.u32 %v1660_v61, %v479_v7 }
 0x141   :  { %v493_v19 = vor.u32 %v492_v57, %v491_v43  ;;  %v495_v16 = vshrl.u32 %v1661_v5, %v480_v11  ;;  %v342_v6 = vmul.f32 %v341_v55, %v339_v15  ;;  %v481_v48 = vshrl.u32 %v1656_v51, %v480_v11 }
 0x142   :  { %v428_v49 = vsub.s32 0, %v1963_v37  ;;  %v513_v8 = vshll.u32 %v473_v50, 8  ;;  %vm497_vm14 = vcmp.lt.s32.totalorder %v478_v40, 1  ;;  %vm499_vm15 = vcmp.lt.s32.totalorder %v478_v40, 3 }
 0x143   :  { %v496_v59 = vor.u32 %v495_v16, %v494_v47  ;;  %vm500_vm0 = vcmp.lt.s32.totalorder %v478_v40, 4  ;;  %v343_v45 = vxor.u32 2147483648, %v342_v6  ;;  %v501_v4 = vsel %vm497_vm14, %v481_v48, %v484_v52 }
 0x144   :  { %v1470_v0 = vmin.u32 %v428_v49, %v1963_v37  ;;  %v502_v46 = vsel %vm500_vm0, %v490_v60, 2102212464  ;;  %vm498_vm2 = vcmp.lt.s32.totalorder %v478_v40, 2  ;;  %v505_v5 = vsel %vm497_vm14, %v484_v52, %v487_v2 }
 0x145   :  { %v503_v61 = vsel %vm499_vm15, %v487_v2, %v502_v46  ;;  %v506_v7 = vsel %vm500_vm0, %v493_v19, 920167782  ;;  %v344_v51 = vsel %vm261_vm8, %v343_v45, %v342_v6  ;;  %v509_v20 = vsel %vm497_vm14, %v487_v2, %v490_v60 }
 0x146   :  { %v430_v50 = vclz %v1470_v0  ;;  %v507_v11 = vsel %vm499_vm15, %v490_v60, %v506_v7  ;;  %v347_v22 = vsel %vm1956_vm13, %v1746_v17, %v344_v51  ;;  %v504_v24 = vsel %vm498_vm2, %v501_v4, %v503_v61 }
 0x147   :  { %v508_v34 = vsel %vm498_vm2, %v505_v5, %v507_v11  ;;  %v510_v53 = vsel %vm500_vm0, %v496_v59, 1326507024  ;;  %1566 = vcosq.f32 %v347_v22  ;;  %v661_v32 = vadd.s32 3, %v1933_v9 }
 0x148   :  { %v1471_v25 = vadd.s32 4294967294, %v430_v50  ;;  %v511_v30 = vsel %vm499_vm15, %v493_v19, %v510_v53  ;;  %1568 = vsinq.f32 %v347_v22  ;;  %v249_v62 = vand.u32 3, %v1933_v9 }
 0x149   :  { %v1563_v33 = vpop.eup %1562  ;;  %v512_v29 = vsel %vm498_vm2, %v509_v20, %v511_v30  ;;  %v1985_v63 = vmul.u32.u64.low %v513_v8, %v508_v34  ;;  %v1986_v41 = vmul.u32.u64.high %v513_v8, %v508_v34, %v1985_v63  ;;  %v348_v52 = vsel %vm1956_vm13, 0, %v1938_v3 }
 0x14a   :  { %v1565_v56 = vpop.eup %1564  ;;  %vm1472_vm3 = vcmp.lt.s32.totalorder %v1471_v25, 0  ;;  %v1989_v58 = vmul.u32.u64.low %v513_v8, %v512_v29  ;;  %v1990_v27 = vmul.u32.u64.high %v513_v8, %v512_v29, %v1989_v58  ;;  %v418_v40 = vadd.s32 %v1902_v10, %v1910_v35 }
 0x14b   :  { %v433_v55 = vsel %vm1472_vm3, 0, %v1471_v25  ;;  %v520_v15 = vmul.u32 %v513_v8, %v504_v24  ;;  %v523_v60 = vadd.s32 1, %v1986_v41  ;;  %v252_v2 = vxor.u32 2147483648, %v1565_v56 }
 0x14c   :  { %v434_v43 = vsub.s32 32, %v433_v55  ;;  %v438_v57 = vsub.s32 4294967266, %v433_v55  ;;  %v255_v19 = vxor.u32 2147483648, %v1563_v33  ;;  %v662_v47 = vand.u32 3, %v661_v32 }
 0x14d   :  { %v435_v16 = vshll.u32 %v1963_v37, %v433_v55  ;;  %vm522_vm4 = vc.u32 %v1990_v27, %v1985_v63  ;;  %v352_v3 = vand.u32 3, %v348_v52  ;;  %vm364_vm5 = vcmp.lt.s32.totalorder %v1758_v26, 0 }
 0x14e   :  { %v436_v6 = vshrl.u32 %v418_v40, %v434_v43  ;;  %v439_v9 = vadd.s32 127, %v438_v57  ;;  %v524_v10 = vsel %vm522_vm4, %v523_v60, %v1986_v41  ;;  %vm251_vm6 = vcmp.eq.s32.totalorder %v249_v62, 0 }
 0x14f   :  { %v525_v49 = vadd.s32 %v524_v10, %v520_v15  ;;  %vm248_vm7 = vweird.f32 %v1742_v14  ;;  %vm254_vm8 = vcmp.eq.s32.totalorder %v249_v62, 2  ;;  %v448_v48 = vsub.s32 4, %v1943_v23 }
 0x150   :  { %v437_v35 = vor.u32 %v436_v6, %v435_v16  ;;  %v440_v54 = vshll.u32 %v439_v9, 23  ;;  %vm250_vm9 = vcmp.lt.s32.totalorder %v249_v62, 2  ;;  %v253_v37 = vsel %vm251_vm6, %v1563_v33, %v252_v2 }
 0x151   :  { %v256_v8 = vsel %vm254_vm8, %v255_v19, %v1565_v56  ;;  %v1567_v59 = vpop.eup %1566  ;;  %vm2008_vm10 = vcmp.le.f32.partialorder %v362_v36, 0.7853982  ;;  %v526_v4 = vadd.s32 536870912, %v525_v49  ;;  %vm664_vm11 = vcmp.eq.s32.totalorder %v662_v47, 0 }
 0x152   :  { %v441_v0 = vor.u32 4788187, %v440_v54  ;;  %vm667_vm12 = vcmp.eq.s32.totalorder %v662_v47, 2  ;;  %v1569_v46 = vpop.eup %1568  ;;  %v666_v61 = vsel %vm664_vm11, %v1563_v33, %v252_v2  ;;  %v358_v7 = vxor.u32 2147483648, %v1567_v59 }
 0x153   :  { %v669_v5 = vsel %vm667_vm12, %v255_v19, %v1565_v56  ;;  %v765_v51 = vadd.s32 3, %v348_v52  ;;  %v444_v11 = vcvt.s32.f32 %v437_v35  ;;  %v2012_v20 = vshrl.u32 %v526_v4, 30 }
 0x154   :  { %v442_v50 = vand.u32 2147483647, %v441_v0  ;;  %v355_v22 = vxor.u32 2147483648, %v1569_v46  ;;  %v449_v36 = vsel %vm364_vm5, %v448_v48, %v1943_v23  ;;  %vm663_vm13 = vcmp.lt.s32.totalorder %v662_v47, 2 }
 0x155   :  { %vm354_vm14 = vcmp.eq.s32.totalorder %v352_v3, 0  ;;  %v766_v24 = vand.u32 3, %v765_v51  ;;  %v528_v53 = vshll.u32 %v2012_v20, 30  ;;  %v670_v25 = vsel %vm663_vm13, %v666_v61, %v669_v5 }
 0x156   :  { %v445_v34 = vmul.f32 %v444_v11, %v442_v50  ;;  %vm357_vm15 = vcmp.eq.s32.totalorder %v352_v3, 2  ;;  %v257_v30 = vsel %vm250_vm9, %v253_v37, %v256_v8  ;;  %vm353_vm0 = vcmp.lt.s32.totalorder %v352_v3, 2 }
 0x157   :  { %v356_v32 = vsel %vm354_vm14, %v1567_v59, %v355_v22  ;;  %v359_v33 = vsel %vm357_vm15, %v358_v7, %v1569_v46  ;;  %v529_v41 = vsub.s32 %v525_v49, %v528_v53  ;;  %vm768_vm2 = vcmp.eq.s32.totalorder %v766_v24, 0 }
 0x158   :  { %v446_v29 = vxor.u32 2147483648, %v445_v34  ;;  %vm771_vm3 = vcmp.eq.s32.totalorder %v766_v24, 2  ;;  %v2021_v23 = vsel %vm248_vm7, nan, %v670_v25  ;;  %vm767_vm4 = vcmp.lt.s32.totalorder %v766_v24, 2 }
 0x159   :  { %v770_v56 = vsel %vm768_vm2, %v1567_v59, %v355_v22  ;;  %v773_v58 = vsel %vm771_vm3, %v358_v7, %v1569_v46  ;;  %v531_v55 = vsub.s32 0, %v529_v41  ;;  %v360_v62 = vsel %vm353_vm0, %v356_v32, %v359_v33 }
 0x15a   :  { %v447_v52 = vsel %vm364_vm5, %v446_v29, %v445_v34  ;;  %v774_v40 = vsel %vm767_vm4, %v770_v56, %v773_v58  ;;  %v2030_v57 = vsel %vm248_vm7, nan, %v257_v30  ;;  %vm351_vm6 = vweird.f32 %v1746_v17 }
 0x15b   :  { %v450_v43 = vsel %vm2008_vm10, %v1758_v26, %v447_v52  ;;  %v1474_v15 = vmin.u32 %v531_v55, %v529_v41  ;;  %v2033_v60 = vsel %vm351_vm6, nan, %v774_v40  ;;  %v451_v2 = vsel %vm2008_vm10, 0, %v449_v36 }
 0x15c   :  { %1570 = vcosq.f32 %v450_v43  ;;  %v1106_v19 = vmul.f32 %v1738_v12, %v2021_v23  ;;  %v2039_v47 = vsel %vm351_vm6, nan, %v360_v62  ;;  %v984_v14 = vsub.f32 0.0, %v2021_v23 }
 0x15d   :  { %1572 = vsinq.f32 %v450_v43  ;;  %v533_v16 = vclz %v1474_v15  ;;  %v1098_v6 = vmul.f32 %v1763_v31, %v2030_v57  ;;  %v1107_v17 = vmul.f32 %v1740_v13, %v2033_v60 }
 0x15e   :  { %v985_v9 = vsub.f32 0.0, %v2033_v60  ;;  %v1094_v10 = vmul.f32 %v1738_v12, %v2030_v57  ;;  %v1095_v35 = vmul.f32 %v1740_v13, %v2039_v47  ;;  %v869_v54 = vadd.s32 3, %v451_v2 }
 0x15f   :  { %v1475_v3 = vadd.s32 4294967294, %v533_v16  ;;  %v1102_v49 = vmul.f32 %v1763_v31, %v984_v14  ;;  %v2054_v48 = vadd.f32 %v1106_v19, %v1098_v6  ;;  %v1099_v37 = vmul.f32 %v1766_v38, %v2039_v47 }
 0x160   :  { %v1103_v8 = vmul.f32 %v1766_v38, %v985_v9  ;;  %v455_v59 = vand.u32 3, %v451_v2  ;;  %v521_v31 = vadd.s32 %v1985_v63, %v1990_v27  ;;  %v870_v61 = vand.u32 3, %v869_v54 }
 0x161   :  { %vm1476_vm5 = vcmp.lt.s32.totalorder %v1475_v3, 0  ;;  %v2061_v45 = vadd.f32 %v1102_v49, %v1094_v10  ;;  %v2065_v0 = vadd.f32 %v1107_v17, %v1099_v37  ;;  %vm454_vm13 = vweird.f32 %v1758_v26 }
 0x162   :  { %v536_v12 = vsel %vm1476_vm5, 0, %v1475_v3  ;;  %v2063_v13 = vadd.f32 %v1103_v8, %v1095_v35  ;;  %vm456_vm7 = vcmp.lt.s32.totalorder %v455_v59, 2  ;;  %vm460_vm8 = vcmp.eq.s32.totalorder %v455_v59, 2 }
 0x163   :  { %v537_v4 = vsub.s32 32, %v536_v12  ;;  %v541_v46 = vsub.s32 4294967266, %v536_v12  ;;  %v538_v7 = vshll.u32 %v529_v41, %v536_v12  ;;  %vm875_vm9 = vcmp.eq.s32.totalorder %v870_v61, 2 }
 0x164   :  { %vm457_vm10 = vcmp.eq.s32.totalorder %v455_v59, 0  ;;  %vm872_vm11 = vcmp.eq.s32.totalorder %v870_v61, 0  ;;  %vm871_vm12 = vcmp.lt.s32.totalorder %v870_v61, 2  ;;  %v551_v26 = vsub.s32 4, %v2012_v20 }
 0x165   :  { %v539_v51 = vshrl.u32 %v521_v31, %v537_v4  ;;  %v542_v50 = vadd.s32 127, %v541_v46  ;;  %vm467_vm14 = vcmp.lt.s32.totalorder %v1760_v28, 0  ;;  %vm466_vm15 = vcmp.le.f32.partialorder %v465_v44, 0.7853982 }
 0x166   :  { %v1571_v5 = vpop.eup %1570  ;;  %v552_v17 = vsel %vm467_vm14, %v551_v26, %v2012_v20 }
 0x167   :  { %v1573_v38 = vpop.eup %1572  ;;  %v461_v11 = vxor.u32 2147483648, %v1571_v5  ;;  %v540_v22 = vor.u32 %v539_v51, %v538_v7  ;;  %v543_v36 = vshll.u32 %v542_v50, 23  ;;  %v554_v10 = vsel %vm466_vm15, 0, %v552_v17 }
 0x168   :  { %v458_v24 = vxor.u32 2147483648, %v1573_v38  ;;  %v558_v35 = vand.u32 3, %v554_v10 }
 0x169   :  { %v462_v34 = vsel %vm460_vm8, %v461_v11, %v1573_v38  ;;  %v877_v53 = vsel %vm875_vm9, %v461_v11, %v1573_v38  ;;  %v544_v63 = vor.u32 4788187, %v543_v36  ;;  %v547_v29 = vcvt.s32.f32 %v540_v22 }
 0x16a   :  { %v459_v27 = vsel %vm457_vm10, %v1571_v5, %v458_v24  ;;  %v874_v25 = vsel %vm872_vm11, %v1571_v5, %v458_v24  ;;  %vm563_vm0 = vcmp.eq.s32.totalorder %v558_v35, 2  ;;  %vm560_vm3 = vcmp.eq.s32.totalorder %v558_v35, 0  ;;  %v1120_v24 = vld [vmem:[#allocation2 + $0x28] sm:$0xff] }
 0x16b   :  { %v463_v30 = vsel %vm456_vm7, %v459_v27, %v462_v34  ;;  %v878_v32 = vsel %vm871_vm12, %v874_v25, %v877_v53  ;;  %v545_v33 = vand.u32 2147483647, %v544_v63  ;;  %vm559_vm6 = vcmp.lt.s32.totalorder %v558_v35, 2 }
 0x16c   :  { %v2071_v41 = vsel %vm454_vm13, nan, %v463_v30  ;;  %v2073_v56 = vsel %vm454_vm13, nan, %v878_v32  ;;  %vm557_vm7 = vweird.f32 %v1760_v28 }
 0x16d   :  { %v1108_v58 = vmul.f32 %v1748_v18, %v2073_v56  ;;  %v986_v52 = vsub.f32 0.0, %v2073_v56  ;;  %v1100_v55 = vmul.f32 %v1768_v39, %v2071_v41  ;;  %v548_v62 = vmul.f32 %v547_v29, %v545_v33 }
 0x16e   :  { %v1096_v40 = vmul.f32 %v1748_v18, %v2071_v41 }
 0x16f   :  { %v1104_v43 = vmul.f32 %v1768_v39, %v986_v52  ;;  %v1116_v15 = vadd.f32 %v1108_v58, %v1100_v55  ;;  %v549_v2 = vxor.u32 2147483648, %v548_v62  ;;  %v973_v39 = vadd.s32 3, %v554_v10 }
 0x171   :  { %v1112_v19 = vadd.f32 %v1104_v43, %v1096_v40  ;;  %v1514_v16 = vpack.c.bf16 %v1116_v15, %v2054_v48  ;;  %v550_v6 = vsel %vm467_vm14, %v549_v2, %v548_v62  ;;  %v974_v54 = vand.u32 3, %v973_v39 }
 0x172   :  { %v553_v3 = vsel %vm466_vm15, %v1760_v28, %v550_v6  ;;  %v1119_v28 = vld [vmem:[#allocation2 + $0x20] sm:$0xff] }
 0x173   :  { %v1510_v18 = vpack.c.bf16 %v1112_v19, %v2061_v45  ;;  %1574 = vcosq.f32 %v553_v3  ;;  %vm979_vm2 = vcmp.eq.s32.totalorder %v974_v54, 2  ;;  %vm976_vm4 = vcmp.eq.s32.totalorder %v974_v54, 0 }
 0x174   :  { %1576 = vsinq.f32 %v553_v3  ;;  %vm975_vm5 = vcmp.lt.s32.totalorder %v974_v54, 2 }
 0x17d   :  { %v1575_v49 = vpop.eup %1574 }
 0x17e   :  { %v1577_v37 = vpop.eup %1576  ;;  %v564_v8 = vxor.u32 2147483648, %v1575_v49 }
 0x17f   :  { %v561_v48 = vxor.u32 2147483648, %v1577_v37 }
 0x180   :  { %v565_v44 = vsel %vm563_vm0, %v564_v8, %v1577_v37  ;;  %v981_v20 = vsel %vm979_vm2, %v564_v8, %v1577_v37  ;;  %v1251_v37 = vld [vmem:[#allocation5 + $0x18] sm:$0xff] }
 0x181   :  { %v562_v59 = vsel %vm560_vm3, %v1575_v49, %v561_v48  ;;  %v978_v12 = vsel %vm976_vm4, %v1575_v49, %v561_v48 }
 0x182   :  { %v566_v45 = vsel %vm559_vm6, %v562_v59, %v565_v44  ;;  %v982_v31 = vsel %vm975_vm5, %v978_v12, %v981_v20 }
 0x183   :  { %v567_v4 = vsel %vm557_vm7, nan, %v566_v45  ;;  %v983_v46 = vsel %vm557_vm7, nan, %v982_v31 }
 0x184   :  { %v1109_v61 = vmul.f32 %v1752_v21, %v983_v46  ;;  %v987_v5 = vsub.f32 0.0, %v983_v46  ;;  %v1101_v7 = vmul.f32 %v1770_v42, %v567_v4  ;;  %v1097_v51 = vmul.f32 %v1752_v21, %v567_v4  ;;  %v1121_v21 = vld [vmem:[#allocation2 + $0x30] sm:$0xff] }
 0x186   :  { %v1105_v50 = vmul.f32 %v1770_v42, %v987_v5  ;;  %v1117_v38 = vadd.f32 %v1109_v61, %v1101_v7  ;;  %v1122_v42 = vld [vmem:[#allocation2 + $0x38] sm:$0xff] }
 0x188   :  { %v1113_v11 = vadd.f32 %v1105_v50, %v1097_v51  ;;  %v1512_v22 = vpack.c.bf16 %v1117_v38, %v2065_v0 }
 0x18a   :  { %v1508_v36 = vpack.c.bf16 %v1113_v11, %v2063_v13 }
 0x18c   :  { %1509 = vmatprep.subr.bf16.mxu0 %v1508_v36 }
 0x18d   :  { %1511 = vmatpush1.bf16.msra.mxu0 %v1510_v18 }
 0x18e   :  { %1513 = vmatprep.subr.bf16.mxu0 %v1512_v22 }
 0x191   :  { %1515 = vmatpush1.bf16.msra.mxu0 %v1514_v16 }
 0x194   :  { %1499 = vmatmul.mubr.msk.f32.vlgmr.msra.gmra.mrb[4].mxu0 %vm992_vm1, %v1119_v28  ;;  %v1361_v28 = vld [vmem:[%s2150_s4] sm:$0xf] }
 0x195   :  { %1205 = vmatprep.mubr.f32.mxu0 %v1654_v1 }
 0x198   :  { %1500 = vmatmul.mubr.msk.f32.gmra.mrb[6].mxu0 %vm992_vm1, %v1120_v24 }
 0x199   :  { %1211 = vmatprep.mubr.f32.mxu0 %v1654_v1 }
 0x19c   :  { %1501 = vmatmul.mubr.msk.f32.gmra.mrb[8].mxu0 %vm992_vm1, %v1121_v21 }
 0x19d   :  { %1217 = vmatprep.mubr.f32.mxu0 %v1654_v1 }
 0x1a0   :  { %1502 = vmatmul.mubr.msk.f32.gmra.mrb[10].mxu0 %vm992_vm1, %v1122_v42 }
 0x1a1   :  { %1429 = vmatprep.mubr.f32.mxu0 %v1654_v1 }
 0x267   :  { %v1201_v13 = vpop.f32.mrb[4].mxu0 }
 0x268   :  { %v1203_v0 = vpop.f32.mrb[5].mxu0  ;;  %v1224_v27 = vmul.f32 %v1201_v13, %v2030_v57  ;;  %v1236_v25 = vmul.f32 %v1201_v13, %v2021_v23 }
 0x269   :  { %v1225_v29 = vmul.f32 %v1203_v0, %v2039_v47  ;;  %v1237_v58 = vmul.f32 %v1203_v0, %v2033_v60 }
 0x26b   :  { %v1207_v34 = vpop.f32.mrb[6].mxu0 }
 0x26c   :  { %v1209_v53 = vpop.f32.mrb[7].mxu0  ;;  %v1238_v23 = vmul.f32 %v1207_v34, %v2073_v56  ;;  %v1249_v56 = vld [vmem:[#allocation5 + $0x8] sm:$0xff] }
 0x26d   :  { %v1227_v6 = vmul.f32 %v1209_v53, %v567_v4 }
 0x26f   :  { %v1213_v63 = vpop.f32.mrb[8].mxu0 }
 0x270   :  { %v1228_v30 = vmul.f32 %v1213_v63, %v2030_v57  ;;  %v1232_v32 = vmul.f32 %v1213_v63, %v984_v14  ;;  %v1215_v33 = vpop.f32.mrb[9].mxu0  ;;  %v1226_v57 = vmul.f32 %v1207_v34, %v2071_v41 }
 0x271   :  { %v1229_v55 = vmul.f32 %v1215_v33, %v2039_v47  ;;  %v1233_v62 = vmul.f32 %v1215_v33, %v985_v9  ;;  %v1239_v47 = vmul.f32 %v1209_v53, %v983_v46 }
 0x272   :  { %v1240_v26 = vadd.f32 %v1232_v32, %v1224_v27  ;;  %v1244_v40 = vadd.f32 %v1236_v25, %v1228_v30 }
 0x273   :  { %v1241_v43 = vadd.f32 %v1233_v62, %v1225_v29  ;;  %v1245_v15 = vadd.f32 %v1237_v58, %v1229_v55  ;;  %v1219_v2 = vpop.f32.mrb[10].mxu0 }
 0x274   :  { %v1230_v14 = vmul.f32 %v1219_v2, %v2071_v41  ;;  %v1234_v19 = vmul.f32 %v1219_v2, %v986_v52  ;;  %v1221_v16 = vpop.f32.mrb[11].mxu0  ;;  %v1248_v41 = vld [vmem:[#allocation5] sm:$0xff]  ;;  %v1250_v52 = vld [vmem:[#allocation5 + $0x10] sm:$0xff] }
 0x275   :  { %v1231_v17 = vmul.f32 %v1221_v16, %v567_v4  ;;  %v1235_v60 = vmul.f32 %v1221_v16, %v987_v5 }
 0x276   :  { %v1242_v9 = vadd.f32 %v1234_v19, %v1226_v57  ;;  %v1246_v3 = vadd.f32 %v1238_v23, %v1230_v14 }
 0x277   :  { %v1243_v18 = vadd.f32 %v1235_v60, %v1227_v6  ;;  %v1247_v10 = vadd.f32 %v1239_v47, %v1231_v17 }
 0x278   :  { %v1518_v39 = vpack.c.bf16 %v1242_v9, %v1240_v26  ;;  %v1522_v35 = vpack.c.bf16 %v1246_v3, %v1244_v40 }
 0x279   :  { %v1516_v54 = vpack.c.bf16 %v1243_v18, %v1241_v43  ;;  %v1520_v49 = vpack.c.bf16 %v1247_v10, %v1245_v15 }
 0x27b   :  { %1517 = vmatprep.subr.bf16.mxu1 %v1516_v54 }
 0x27c   :  { %1519 = vmatpush1.bf16.msra.mxu1 %v1518_v39 }
 0x27d   :  { %1521 = vmatprep.subr.bf16.mxu1 %v1520_v49 }
 0x280   :  { %1523 = vmatpush1.bf16.msra.mxu1 %v1522_v35 }
 0x283   :  { %1503 = vmatmul.mubr.msk.f32.vlgmr.msra.gmra.mrb[8].mxu1 %vm992_vm1, %v1248_v41 }
 0x284   :  { %1334 = vmatprep.mubr.f32.mxu1 %v1654_v1 }
 0x287   :  { %1504 = vmatmul.mubr.msk.f32.gmra.mrb[10].mxu1 %vm992_vm1, %v1249_v56 }
 0x288   :  { %1340 = vmatprep.mubr.f32.mxu1 %v1654_v1 }
 0x28b   :  { %1505 = vmatmul.mubr.msk.f32.gmra.mrb[12].mxu1 %vm992_vm1, %v1250_v52 }
 0x28c   :  { %1346 = vmatprep.mubr.f32.mxu1 %v1654_v1 }
 0x28f   :  { %1506 = vmatmul.mubr.msk.f32.gmra.mrb[14].mxu1 %vm992_vm1, %v1251_v37 }
 0x356   :  { %v1330_v8 = vpop.f32.mrb[8].mxu1 }
 0x357   :  { %v1332_v48 = vpop.f32.mrb[9].mxu1  ;;  %v1353_v20 = vmul.f32 %v1330_v8, %v1330_v8 }
 0x358   :  { %v1354_v45 = vmul.f32 %v1332_v48, %v1332_v48 }
 0x35a   :  { %v1336_v44 = vpop.f32.mrb[10].mxu1 }
 0x35b   :  { %v1355_v59 = vmul.f32 %v1336_v44, %v1336_v44  ;;  %v1338_v12 = vpop.f32.mrb[11].mxu1 }
 0x35c   :  { %v1356_v31 = vmul.f32 %v1338_v12, %v1338_v12 }
 0x35d   :  { %v1526_v4 = vpack.c.bf16 %v1355_v59, %v1353_v20 }
 0x35e   :  { %v1524_v46 = vpack.c.bf16 %v1356_v31, %v1354_v45  ;;  %v1342_v61 = vpop.f32.mrb[12].mxu1 }
 0x35f   :  { %v1344_v5 = vpop.f32.mrb[13].mxu1  ;;  %v1357_v51 = vmul.f32 %v1342_v61, %v1342_v61 }
 0x360   :  { %1525 = vmatprep.subr.bf16.mxu0 %v1524_v46  ;;  %v1358_v38 = vmul.f32 %v1344_v5, %v1344_v5 }
 0x361   :  { %1527 = vmatpush1.bf16.msra.mxu0 %v1526_v4 }
 0x362   :  { %v1348_v7 = vpop.f32.mrb[14].mxu1 }
 0x363   :  { %v1359_v1 = vmul.f32 %v1348_v7, %v1348_v7  ;;  %v1350_v50 = vpop.f32.mrb[15].mxu1 }
 0x364   :  { %v1360_v11 = vmul.f32 %v1350_v50, %v1350_v50 }
 0x365   :  { %v1530_v22 = vpack.c.bf16 %v1359_v1, %v1357_v51 }
 0x366   :  { %v1528_v36 = vpack.c.bf16 %v1360_v11, %v1358_v38 }
 0x368   :  { %1529 = vmatprep.subr.bf16.mxu0 %v1528_v36 }
 0x369   :  { %1531 = vmatpush1.bf16.msra.mxu0 %v1530_v22 }
 0x36c   :  { %1507 = vmatmul.mubr.msk.f32.vlgmr.msra.gmra.mrb[12].mxu0 %vm992_vm1, %v1361_v28 }
 0x43f   :  { %v1431_v24 = vpop.f32.mrb[12].mxu0 }
 0x440   :  { %v1433_v21 = vpop.f32.mrb[13].mxu0 }
 0x441   :  { %v1438_v42 = vcombine.low %v1431_v24, %v1433_v21 }
 0x443   :  { %1440 = vst [vmem:[#allocation7] sm:$0xff] %v1438_v42 }
 0x444   :  { %1633 = shalt.err (!%p1630_p6)
}
 0x445   :  { %s1634_s4 = scalar_lea.hbm %s2151_s5, 128 }
 0x446   :  { %p1635_p7 = scmp.ne.s32.totalorder %s2151_s5, %s1634_s4  ;;  %p1638_p8 = scmp.lt.u32.totalorder %s1634_s4, %s2151_s5 }
 0x448   :  { %p1640_p9 = pnand %p1638_p8, %p1635_p7 }
 0x44a   :  { %1643 = shalt.err (!%p1640_p9)
}
 0x44b   :  { %1450 = dma.vmem_to_hbm [thread:$0]  %s1448_s24, 128, %s2151_s5, [#allocation4]  }
 0x44c   :  { %1648 = dma.done.wait [#allocation4], 128  }
 0x44d   :  { %1649 = vsyncadd [#allocation4], 4294967168 }
 0x44e   :  { %1454 = vsyncpa [#allocation3], 1 }
 0x44f   :  { %1455 = vsyncpa [#allocation6], 1 }
 0x450   :  { %1456 = vsyncpa [#allocation4], 1 }

</bundles_post_ra>
